<compile_context>
chip_gen: v5e
topology: v5e:2x2
jax: 0.10.0
libtpu: 0.0.40
codegen_flags: <defaults>
</compile_context>

<pallas_src>
from functools import partial

import jax
import jax.numpy as jnp
from jax.experimental import pallas as pl
from jax.experimental.pallas import tpu as pltpu

EPS = 1e-5  # nn.BatchNorm2d default eps


# ----------------------------- kernel helpers -------------------------------
def _pad_into(dst_ref, interior, *, N, H, C, LC):
    """Zero only the 1-pixel border of dst_ref and copy `interior` into the middle.

    dst_ref : VMEM ref (N, H+2, (W+2)*C)   lane axis = merged (W+2, C)
    interior: value    (N, H,   W*C)
    """
    z_col = jnp.zeros((N, H + 2, C), jnp.float32)
    dst_ref[:, :, 0:C] = z_col                  # left padded pixel column (wx = 0)
    dst_ref[:, :, LC - C:LC] = z_col            # right padded pixel column (wx = W+1)
    z_row = jnp.zeros((N, 1, LC), jnp.float32)
    dst_ref[:, 0:1, :] = z_row                  # top padded row
    dst_ref[:, H + 1:H + 2, :] = z_row          # bottom padded row
    dst_ref[:, 1:H + 1, C:LC - C] = interior    # valid H x W interior


def _conv_bn_relu(src_ref, w_ref, m_ref, bias_row, gamma_row, beta_row,
                  *, NH, H, LC, inv_npix):
    """3x3 conv (3 banded matmuls) + bias + BatchNorm(batch stats) + ReLU.

    src_ref : (N, H+2, LC) padded input, lane axis = merged (W+2, Ci)
    w_ref   : (3, LC, W*Co) banded weights, one slab per vertical tap dy
    returns : (NH, W*Co) lane-dense activation (f32)
    """
    # conv: accumulate directly from the first dot (no zeros init).
    acc = jnp.dot(src_ref[:, 0:H, :].reshape(NH, LC), w_ref[0],
                  preferred_element_type=jnp.float32)
    for dy in (1, 2):
        acc = acc + jnp.dot(src_ref[:, dy:dy + H, :].reshape(NH, LC), w_ref[dy],
                            preferred_element_type=jnp.float32)
    acc = acc + bias_row                                     # conv bias, lane-tiled

    # One-pass batch statistics: per-lane sum and sum-of-squares, then one tiny
    # matmul against the 0/1 "same channel" matrix M reduces over the W lane
    # groups AND re-broadcasts the per-channel stats back to all lanes.
    s = jnp.sum(acc, axis=0, keepdims=True)                  # (1, W*Co)
    q = jnp.sum(acc * acc, axis=0, keepdims=True)            # (1, W*Co)
    mean = jnp.dot(s, m_ref[...], preferred_element_type=jnp.float32) * inv_npix
    ex2 = jnp.dot(q, m_ref[...], preferred_element_type=jnp.float32) * inv_npix
    var = ex2 - mean * mean                                  # biased (training-mode) var

    scale = gamma_row * jax.lax.rsqrt(var + EPS)
    shift = beta_row - mean * scale
    return jnp.maximum(acc * scale + shift, 0.0)


def double_conv_kernel(x_ref, w1_ref, w2_ref, m_ref, p_ref, o_ref,
                       xpad_ref, hpad_ref, *, N, H, W, Cin, Cout):
    NH = N * H
    inv_npix = 1.0 / float(N * H * W)
    LC1 = (W + 2) * Cin
    LC2 = (W + 2) * Cout

    # ---- conv1 -> BN -> ReLU ----
    _pad_into(xpad_ref, x_ref[...], N=N, H=H, C=Cin, LC=LC1)
    y1 = _conv_bn_relu(xpad_ref, w1_ref, m_ref,
                       p_ref[0:1, :], p_ref[1:2, :], p_ref[2:3, :],
                       NH=NH, H=H, LC=LC1, inv_npix=inv_npix)

    # ---- conv2 -> BN -> ReLU ----
    _pad_into(hpad_ref, y1.reshape(N, H, W * Cout), N=N, H=H, C=Cout, LC=LC2)
    y2 = _conv_bn_relu(hpad_ref, w2_ref, m_ref,
                       p_ref[3:4, :], p_ref[4:5, :], p_ref[5:6, :],
                       NH=NH, H=H, LC=LC2, inv_npix=inv_npix)

    # Lane-dense output: (N, H, W*Cout) -> unmasked full-width stores.
    o_ref[...] = y2.reshape(N, H, W * Cout)


# ------------------------------- wrapper -------------------------------------
def _banded_weights(w_torch, W):
    """PyTorch conv weight (Co, Ci, 3, 3) -> banded matmul weights (3, (W+2)*Ci, W*Co).

    B[dy, wx*Ci + ci, w*Co + co] = w_torch[co, ci, dy, wx - w] for 0 <= wx-w < 3,
    zero otherwise.  Then row_slice(padded NHWC input, dy) @ B[dy] is the dy-th
    vertical tap of the 3x3 conv for every (w, co) at once, with the result
    already in the lane-dense (N*H, W*Co) layout.
    """
    Co, Ci, KH, KW = w_torch.shape
    Wp = W + 2
    wk = jnp.transpose(w_torch, (2, 3, 1, 0)).astype(jnp.float32)   # (dy, dx, Ci, Co)
    d = jnp.arange(KW)[:, None, None]
    p = jnp.arange(Wp)[None, :, None]
    w = jnp.arange(W)[None, None, :]
    sel = (p == w + d).astype(jnp.float32)                          # (dx, Wp, W)
    b = jnp.einsum('dpw,edio->epiwo', sel, wk)                      # (dy, Wp, Ci, W, Co)
    return b.reshape(KH, Wp * Ci, W * Co)


def double_conv(x_nchw, params):
    """x_nchw: (N, Cin, H, W) float32 (PyTorch layout). Returns (N, Cout, H, W)."""
    w1, b1, g1, bt1, w2, b2, g2, bt2 = params
    N, Cin, H, W = x_nchw.shape
    Cout = w1.shape[0]
    LO = W * Cout

    # NCHW -> NHWC with (W, C) merged onto the lane axis.  No jnp.pad here: the
    # 1-pixel spatial zero-padding is done inside the kernel in VMEM.
    x = jnp.transpose(x_nchw, (0, 2, 3, 1)).astype(jnp.float32).reshape(N, H, W * Cin)

    w1b = _banded_weights(w1, W)                 # (3, (W+2)*Cin,  W*Cout)
    w2b = _banded_weights(w2, W)                 # (3, (W+2)*Cout, W*Cout)

    # 0/1 "same channel" matrix for the in-kernel BN stat reduce + re-broadcast.
    lane = jnp.arange(LO)
    m = (lane[:, None] % Cout == lane[None, :] % Cout).astype(jnp.float32)

    # Pack all six per-channel vectors, lane-tiled, into one (8, W*Cout) input.
    def tile_c(v):
        return jnp.tile(v.astype(jnp.float32), W)
    p = jnp.stack([tile_c(b1), tile_c(g1), tile_c(bt1),
                   tile_c(b2), tile_c(g2), tile_c(bt2),
                   jnp.zeros((LO,), jnp.float32), jnp.zeros((LO,), jnp.float32)])

    vmem = pl.BlockSpec(memory_space=pltpu.MemorySpace.VMEM)
    kern = partial(double_conv_kernel, N=N, H=H, W=W, Cin=Cin, Cout=Cout)

    out = pl.pallas_call(
        kern,
        out_shape=jax.ShapeDtypeStruct((N, H, LO), jnp.float32),
        in_specs=[vmem] * 5,
        out_specs=vmem,
        scratch_shapes=[pltpu.VMEM((N, H + 2, (W + 2) * Cin), jnp.float32),
                        pltpu.VMEM((N, H + 2, (W + 2) * Cout), jnp.float32)],
    )(x, w1b, w2b, m, p)

    out = out.reshape(N, H, W, Cout)
    return jnp.transpose(out, (0, 3, 1, 2))      # back to NCHW


# ------------------------------ reference ------------------------------------
def _reference(x_nchw, params):
    """Pure-JAX reference (NCHW conv + training-mode BN + ReLU) for sanity."""
    w1, b1, g1, bt1, w2, b2, g2, bt2 = params

    def conv_bn_relu(x, w, b, g, bt):
        y = jax.lax.conv_general_dilated(
            x, w, window_strides=(1, 1), padding=((1, 1), (1, 1)),
            dimension_numbers=("NCHW", "OIHW", "NCHW"))
        y = y + b[None, :, None, None]
        mean = jnp.mean(y, axis=(0, 2, 3), keepdims=True)
        var = jnp.mean((y - mean) ** 2, axis=(0, 2, 3), keepdims=True)
        y = (y - mean) * jax.lax.rsqrt(var + EPS)
        y = y * g[None, :, None, None] + bt[None, :, None, None]
        return jnp.maximum(y, 0.0)

    x = conv_bn_relu(x_nchw, w1, b1, g1, bt1)
    return conv_bn_relu(x, w2, b2, g2, bt2)


if __name__ == "__main__":
    N, Cin, Cout, H, W = 2, 4, 8, 16, 16

    key = jax.random.PRNGKey(0)
    kx, kw1, kb1, kw2, kb2 = jax.random.split(key, 5)

    x = jax.random.normal(kx, (N, Cin, H, W), dtype=jnp.float32)

    # Deterministic synthetic parameters (PyTorch-shaped):
    w1 = 0.1 * jax.random.normal(kw1, (Cout, Cin, 3, 3), dtype=jnp.float32)
    b1 = 0.1 * jax.random.normal(kb1, (Cout,), dtype=jnp.float32)
    w2 = 0.1 * jax.random.normal(kw2, (Cout, Cout, 3, 3), dtype=jnp.float32)
    b2 = 0.1 * jax.random.normal(kb2, (Cout,), dtype=jnp.float32)
    # BatchNorm2d default init: gamma = 1, beta = 0 (still applied in-kernel)
    g1 = jnp.ones((Cout,), jnp.float32)
    bt1 = jnp.zeros((Cout,), jnp.float32)
    g2 = jnp.ones((Cout,), jnp.float32)
    bt2 = jnp.zeros((Cout,), jnp.float32)

    params = (w1, b1, g1, bt1, w2, b2, g2, bt2)

    out = double_conv(x, params)
    out = jax.block_until_ready(out)

    ref = jax.block_until_ready(_reference(x, params))
    assert out.shape == (N, Cout, H, W)
    assert jnp.allclose(out, ref, rtol=1e-3, atol=2e-3), "mismatch vs reference"

    print("KERNEL_OK")
</pallas_src>

<mosaic_0001>
module attributes {stable_mosaic.version = 11 : i64} {
  func.func @double_conv_kernel(%arg0: memref<2x16x64xf32, #tpu.memory_space<vmem>>, %arg1: memref<3x72x128xf32, #tpu.memory_space<vmem>>, %arg2: memref<3x144x128xf32, #tpu.memory_space<vmem>>, %arg3: memref<128x128xf32, #tpu.memory_space<vmem>>, %arg4: memref<8x128xf32, #tpu.memory_space<vmem>>, %arg5: memref<2x16x128xf32, #tpu.memory_space<vmem>>, %arg6: memref<2x18x72xf32, #tpu.memory_space<vmem>>, %arg7: memref<2x18x144xf32, #tpu.memory_space<vmem>>) attributes {dimension_semantics = [], scalar_prefetch = 0 : i64, scratch_operands = 2 : i64, tpu.core_type = #tpu.core_type<tc>} {
    %c0 = arith.constant 0 : index
    %c0_0 = arith.constant 0 : index
    %c0_1 = arith.constant 0 : index
    %0 = vector.load %arg0[%c0, %c0_0, %c0_1] : memref<2x16x64xf32, #tpu.memory_space<vmem>>, vector<2x16x64xf32>
    %cst = arith.constant 0.000000e+00 : f32
    %1 = vector.broadcast %cst : f32 to vector<2x18x4xf32>
    %c0_2 = arith.constant 0 : index
    %c0_3 = arith.constant 0 : index
    %c0_4 = arith.constant 0 : index
    %2 = vector.load %arg6[%c0_2, %c0_3, %c0_4] : memref<2x18x72xf32, #tpu.memory_space<vmem>>, vector<2x18x4xf32>
    tpu.vector_store %arg6[%c0_2, %c0_3, %c0_4], %1 {strides = array<i32>} : memref<2x18x72xf32, #tpu.memory_space<vmem>>, vector<2x18x4xf32>,
    %c0_5 = arith.constant 0 : index
    %c0_6 = arith.constant 0 : index
    %c68 = arith.constant 68 : index
    %3 = vector.load %arg6[%c0_5, %c0_6, %c68] : memref<2x18x72xf32, #tpu.memory_space<vmem>>, vector<2x18x4xf32>
    tpu.vector_store %arg6[%c0_5, %c0_6, %c68], %1 {strides = array<i32>} : memref<2x18x72xf32, #tpu.memory_space<vmem>>, vector<2x18x4xf32>,
    %cst_7 = arith.constant 0.000000e+00 : f32
    %4 = vector.broadcast %cst_7 : f32 to vector<2x1x72xf32>
    %c0_8 = arith.constant 0 : index
    %c0_9 = arith.constant 0 : index
    %c0_10 = arith.constant 0 : index
    %5 = vector.load %arg6[%c0_8, %c0_9, %c0_10] : memref<2x18x72xf32, #tpu.memory_space<vmem>>, vector<2x1x72xf32>
    tpu.vector_store %arg6[%c0_8, %c0_9, %c0_10], %4 {strides = array<i32>} : memref<2x18x72xf32, #tpu.memory_space<vmem>>, vector<2x1x72xf32>,
    %c0_11 = arith.constant 0 : index
    %c17 = arith.constant 17 : index
    %c0_12 = arith.constant 0 : index
    %6 = vector.load %arg6[%c0_11, %c17, %c0_12] : memref<2x18x72xf32, #tpu.memory_space<vmem>>, vector<2x1x72xf32>
    tpu.vector_store %arg6[%c0_11, %c17, %c0_12], %4 {strides = array<i32>} : memref<2x18x72xf32, #tpu.memory_space<vmem>>, vector<2x1x72xf32>,
    %c0_13 = arith.constant 0 : index
    %c1 = arith.constant 1 : index
    %c4 = arith.constant 4 : index
    %7 = vector.load %arg6[%c0_13, %c1, %c4] : memref<2x18x72xf32, #tpu.memory_space<vmem>>, vector<2x16x64xf32>
    tpu.vector_store %arg6[%c0_13, %c1, %c4], %0 {strides = array<i32>} : memref<2x18x72xf32, #tpu.memory_space<vmem>>, vector<2x16x64xf32>,
    %c0_14 = arith.constant 0 : index
    %c0_15 = arith.constant 0 : index
    %8 = vector.load %arg4[%c0_14, %c0_15] : memref<8x128xf32, #tpu.memory_space<vmem>>, vector<1x128xf32>
    %c1_16 = arith.constant 1 : index
    %c0_17 = arith.constant 0 : index
    %9 = vector.load %arg4[%c1_16, %c0_17] : memref<8x128xf32, #tpu.memory_space<vmem>>, vector<1x128xf32>
    %c2 = arith.constant 2 : index
    %c0_18 = arith.constant 0 : index
    %10 = vector.load %arg4[%c2, %c0_18] : memref<8x128xf32, #tpu.memory_space<vmem>>, vector<1x128xf32>
    %c0_19 = arith.constant 0 : index
    %c0_20 = arith.constant 0 : index
    %c0_21 = arith.constant 0 : index
    %11 = vector.load %arg6[%c0_19, %c0_20, %c0_21] : memref<2x18x72xf32, #tpu.memory_space<vmem>>, vector<2x16x72xf32>
    %12 = vector.shape_cast %11 : vector<2x16x72xf32> to vector<32x72xf32>
    %c0_22 = arith.constant 0 : index
    %c0_23 = arith.constant 0 : index
    %c0_24 = arith.constant 0 : index
    %13 = vector.load %arg1[%c0_22, %c0_23, %c0_24] : memref<3x72x128xf32, #tpu.memory_space<vmem>>, vector<1x72x128xf32>
    %14 = vector.shape_cast %13 : vector<1x72x128xf32> to vector<72x128xf32>
    %cst_25 = arith.constant dense<0.000000e+00> : vector<32x128xf32>
    %15 = tpu.matmul %12, %14, %cst_25 {dimension_numbers = #tpu.dot_dimension_numbers<[1], [0], [0], [1], [0, 0, 1, 1], [], []>} : vector<32x72xf32>, vector<72x128xf32>, vector<32x128xf32> -> vector<32x128xf32>
    %c0_26 = arith.constant 0 : index
    %c1_27 = arith.constant 1 : index
    %c0_28 = arith.constant 0 : index
    %16 = vector.load %arg6[%c0_26, %c1_27, %c0_28] : memref<2x18x72xf32, #tpu.memory_space<vmem>>, vector<2x16x72xf32>
    %17 = vector.shape_cast %16 : vector<2x16x72xf32> to vector<32x72xf32>
    %c1_29 = arith.constant 1 : index
    %c0_30 = arith.constant 0 : index
    %c0_31 = arith.constant 0 : index
    %18 = vector.load %arg1[%c1_29, %c0_30, %c0_31] : memref<3x72x128xf32, #tpu.memory_space<vmem>>, vector<1x72x128xf32>
    %19 = vector.shape_cast %18 : vector<1x72x128xf32> to vector<72x128xf32>
    %cst_32 = arith.constant dense<0.000000e+00> : vector<32x128xf32>
    %20 = tpu.matmul %17, %19, %cst_32 {dimension_numbers = #tpu.dot_dimension_numbers<[1], [0], [0], [1], [0, 0, 1, 1], [], []>} : vector<32x72xf32>, vector<72x128xf32>, vector<32x128xf32> -> vector<32x128xf32>
    %21 = arith.addf %15, %20 : vector<32x128xf32>
    %c0_33 = arith.constant 0 : index
    %c2_34 = arith.constant 2 : index
    %c0_35 = arith.constant 0 : index
    %22 = vector.load %arg6[%c0_33, %c2_34, %c0_35] : memref<2x18x72xf32, #tpu.memory_space<vmem>>, vector<2x16x72xf32>
    %23 = vector.shape_cast %22 : vector<2x16x72xf32> to vector<32x72xf32>
    %c2_36 = arith.constant 2 : index
    %c0_37 = arith.constant 0 : index
    %c0_38 = arith.constant 0 : index
    %24 = vector.load %arg1[%c2_36, %c0_37, %c0_38] : memref<3x72x128xf32, #tpu.memory_space<vmem>>, vector<1x72x128xf32>
    %25 = vector.shape_cast %24 : vector<1x72x128xf32> to vector<72x128xf32>
    %cst_39 = arith.constant dense<0.000000e+00> : vector<32x128xf32>
    %26 = tpu.matmul %23, %25, %cst_39 {dimension_numbers = #tpu.dot_dimension_numbers<[1], [0], [0], [1], [0, 0, 1, 1], [], []>} : vector<32x72xf32>, vector<72x128xf32>, vector<32x128xf32> -> vector<32x128xf32>
    %27 = arith.addf %21, %26 : vector<32x128xf32>
    %28 = vector.broadcast %8 : vector<1x128xf32> to vector<32x128xf32>
    %29 = arith.addf %27, %28 : vector<32x128xf32>
    %cst_40 = arith.constant dense<0.000000e+00> : vector<128xf32>
    %30 = vector.multi_reduction <add>, %29, %cst_40 [0] : vector<32x128xf32> to vector<128xf32>
    %31 = vector.shape_cast %30 : vector<128xf32> to vector<1x128xf32>
    %32 = arith.mulf %29, %29 : vector<32x128xf32>
    %cst_41 = arith.constant dense<0.000000e+00> : vector<128xf32>
    %33 = vector.multi_reduction <add>, %32, %cst_41 [0] : vector<32x128xf32> to vector<128xf32>
    %34 = vector.shape_cast %33 : vector<128xf32> to vector<1x128xf32>
    %c0_42 = arith.constant 0 : index
    %c0_43 = arith.constant 0 : index
    %35 = vector.load %arg3[%c0_42, %c0_43] : memref<128x128xf32, #tpu.memory_space<vmem>>, vector<128x128xf32>
    %cst_44 = arith.constant dense<0.000000e+00> : vector<1x128xf32>
    %36 = tpu.matmul %31, %35, %cst_44 {dimension_numbers = #tpu.dot_dimension_numbers<[1], [0], [0], [1], [0, 0, 1, 1], [], []>} : vector<1x128xf32>, vector<128x128xf32>, vector<1x128xf32> -> vector<1x128xf32>
    %cst_45 = arith.constant 0.001953125 : f32
    %37 = vector.broadcast %cst_45 : f32 to vector<1x128xf32>
    %38 = arith.mulf %36, %37 : vector<1x128xf32>
    %c0_46 = arith.constant 0 : index
    %c0_47 = arith.constant 0 : index
    %39 = vector.load %arg3[%c0_46, %c0_47] : memref<128x128xf32, #tpu.memory_space<vmem>>, vector<128x128xf32>
    %cst_48 = arith.constant dense<0.000000e+00> : vector<1x128xf32>
    %40 = tpu.matmul %34, %39, %cst_48 {dimension_numbers = #tpu.dot_dimension_numbers<[1], [0], [0], [1], [0, 0, 1, 1], [], []>} : vector<1x128xf32>, vector<128x128xf32>, vector<1x128xf32> -> vector<1x128xf32>
    %cst_49 = arith.constant 0.001953125 : f32
    %41 = vector.broadcast %cst_49 : f32 to vector<1x128xf32>
    %42 = arith.mulf %40, %41 : vector<1x128xf32>
    %43 = arith.mulf %38, %38 : vector<1x128xf32>
    %44 = arith.subf %42, %43 : vector<1x128xf32>
    %cst_50 = arith.constant 9.99999974E-6 : f32
    %45 = vector.broadcast %cst_50 : f32 to vector<1x128xf32>
    %46 = arith.addf %44, %45 : vector<1x128xf32>
    %47 = math.rsqrt %46 : vector<1x128xf32>
    %48 = arith.mulf %9, %47 : vector<1x128xf32>
    %49 = arith.mulf %38, %48 : vector<1x128xf32>
    %50 = arith.subf %10, %49 : vector<1x128xf32>
    %51 = vector.broadcast %48 : vector<1x128xf32> to vector<32x128xf32>
    %52 = arith.mulf %29, %51 : vector<32x128xf32>
    %53 = vector.broadcast %50 : vector<1x128xf32> to vector<32x128xf32>
    %54 = arith.addf %52, %53 : vector<32x128xf32>
    %cst_51 = arith.constant 0.000000e+00 : f32
    %55 = vector.broadcast %cst_51 : f32 to vector<32x128xf32>
    %56 = arith.maximumf %54, %55 : vector<32x128xf32>
    %57 = vector.shape_cast %56 : vector<32x128xf32> to vector<2x16x128xf32>
    %cst_52 = arith.constant 0.000000e+00 : f32
    %58 = vector.broadcast %cst_52 : f32 to vector<2x18x8xf32>
    %c0_53 = arith.constant 0 : index
    %c0_54 = arith.constant 0 : index
    %c0_55 = arith.constant 0 : index
    %59 = vector.load %arg7[%c0_53, %c0_54, %c0_55] : memref<2x18x144xf32, #tpu.memory_space<vmem>>, vector<2x18x8xf32>
    tpu.vector_store %arg7[%c0_53, %c0_54, %c0_55], %58 {strides = array<i32>} : memref<2x18x144xf32, #tpu.memory_space<vmem>>, vector<2x18x8xf32>,
    %c0_56 = arith.constant 0 : index
    %c0_57 = arith.constant 0 : index
    %c136 = arith.constant 136 : index
    %60 = vector.load %arg7[%c0_56, %c0_57, %c136] : memref<2x18x144xf32, #tpu.memory_space<vmem>>, vector<2x18x8xf32>
    tpu.vector_store %arg7[%c0_56, %c0_57, %c136], %58 {strides = array<i32>} : memref<2x18x144xf32, #tpu.memory_space<vmem>>, vector<2x18x8xf32>,
    %cst_58 = arith.constant 0.000000e+00 : f32
    %61 = vector.broadcast %cst_58 : f32 to vector<2x1x144xf32>
    %c0_59 = arith.constant 0 : index
    %c0_60 = arith.constant 0 : index
    %c0_61 = arith.constant 0 : index
    %62 = vector.load %arg7[%c0_59, %c0_60, %c0_61] : memref<2x18x144xf32, #tpu.memory_space<vmem>>, vector<2x1x144xf32>
    tpu.vector_store %arg7[%c0_59, %c0_60, %c0_61], %61 {strides = array<i32>} : memref<2x18x144xf32, #tpu.memory_space<vmem>>, vector<2x1x144xf32>,
    %c0_62 = arith.constant 0 : index
    %c17_63 = arith.constant 17 : index
    %c0_64 = arith.constant 0 : index
    %63 = vector.load %arg7[%c0_62, %c17_63, %c0_64] : memref<2x18x144xf32, #tpu.memory_space<vmem>>, vector<2x1x144xf32>
    tpu.vector_store %arg7[%c0_62, %c17_63, %c0_64], %61 {strides = array<i32>} : memref<2x18x144xf32, #tpu.memory_space<vmem>>, vector<2x1x144xf32>,
    %c0_65 = arith.constant 0 : index
    %c1_66 = arith.constant 1 : index
    %c8 = arith.constant 8 : index
    %64 = vector.load %arg7[%c0_65, %c1_66, %c8] : memref<2x18x144xf32, #tpu.memory_space<vmem>>, vector<2x16x128xf32>
    tpu.vector_store %arg7[%c0_65, %c1_66, %c8], %57 {strides = array<i32>} : memref<2x18x144xf32, #tpu.memory_space<vmem>>, vector<2x16x128xf32>,
    %c3 = arith.constant 3 : index
    %c0_67 = arith.constant 0 : index
    %65 = vector.load %arg4[%c3, %c0_67] : memref<8x128xf32, #tpu.memory_space<vmem>>, vector<1x128xf32>
    %c4_68 = arith.constant 4 : index
    %c0_69 = arith.constant 0 : index
    %66 = vector.load %arg4[%c4_68, %c0_69] : memref<8x128xf32, #tpu.memory_space<vmem>>, vector<1x128xf32>
    %c5 = arith.constant 5 : index
    %c0_70 = arith.constant 0 : index
    %67 = vector.load %arg4[%c5, %c0_70] : memref<8x128xf32, #tpu.memory_space<vmem>>, vector<1x128xf32>
    %c0_71 = arith.constant 0 : index
    %c0_72 = arith.constant 0 : index
    %c0_73 = arith.constant 0 : index
    %68 = vector.load %arg7[%c0_71, %c0_72, %c0_73] : memref<2x18x144xf32, #tpu.memory_space<vmem>>, vector<2x16x144xf32>
    %69 = vector.shape_cast %68 : vector<2x16x144xf32> to vector<32x144xf32>
    %c0_74 = arith.constant 0 : index
    %c0_75 = arith.constant 0 : index
    %c0_76 = arith.constant 0 : index
    %70 = vector.load %arg2[%c0_74, %c0_75, %c0_76] : memref<3x144x128xf32, #tpu.memory_space<vmem>>, vector<1x144x128xf32>
    %71 = vector.shape_cast %70 : vector<1x144x128xf32> to vector<144x128xf32>
    %cst_77 = arith.constant dense<0.000000e+00> : vector<32x128xf32>
    %72 = tpu.matmul %69, %71, %cst_77 {dimension_numbers = #tpu.dot_dimension_numbers<[1], [0], [0], [1], [0, 0, 1, 1], [], []>} : vector<32x144xf32>, vector<144x128xf32>, vector<32x128xf32> -> vector<32x128xf32>
    %c0_78 = arith.constant 0 : index
    %c1_79 = arith.constant 1 : index
    %c0_80 = arith.constant 0 : index
    %73 = vector.load %arg7[%c0_78, %c1_79, %c0_80] : memref<2x18x144xf32, #tpu.memory_space<vmem>>, vector<2x16x144xf32>
    %74 = vector.shape_cast %73 : vector<2x16x144xf32> to vector<32x144xf32>
    %c1_81 = arith.constant 1 : index
    %c0_82 = arith.constant 0 : index
    %c0_83 = arith.constant 0 : index
    %75 = vector.load %arg2[%c1_81, %c0_82, %c0_83] : memref<3x144x128xf32, #tpu.memory_space<vmem>>, vector<1x144x128xf32>
    %76 = vector.shape_cast %75 : vector<1x144x128xf32> to vector<144x128xf32>
    %cst_84 = arith.constant dense<0.000000e+00> : vector<32x128xf32>
    %77 = tpu.matmul %74, %76, %cst_84 {dimension_numbers = #tpu.dot_dimension_numbers<[1], [0], [0], [1], [0, 0, 1, 1], [], []>} : vector<32x144xf32>, vector<144x128xf32>, vector<32x128xf32> -> vector<32x128xf32>
    %78 = arith.addf %72, %77 : vector<32x128xf32>
    %c0_85 = arith.constant 0 : index
    %c2_86 = arith.constant 2 : index
    %c0_87 = arith.constant 0 : index
    %79 = vector.load %arg7[%c0_85, %c2_86, %c0_87] : memref<2x18x144xf32, #tpu.memory_space<vmem>>, vector<2x16x144xf32>
    %80 = vector.shape_cast %79 : vector<2x16x144xf32> to vector<32x144xf32>
    %c2_88 = arith.constant 2 : index
    %c0_89 = arith.constant 0 : index
    %c0_90 = arith.constant 0 : index
    %81 = vector.load %arg2[%c2_88, %c0_89, %c0_90] : memref<3x144x128xf32, #tpu.memory_space<vmem>>, vector<1x144x128xf32>
    %82 = vector.shape_cast %81 : vector<1x144x128xf32> to vector<144x128xf32>
    %cst_91 = arith.constant dense<0.000000e+00> : vector<32x128xf32>
    %83 = tpu.matmul %80, %82, %cst_91 {dimension_numbers = #tpu.dot_dimension_numbers<[1], [0], [0], [1], [0, 0, 1, 1], [], []>} : vector<32x144xf32>, vector<144x128xf32>, vector<32x128xf32> -> vector<32x128xf32>
    %84 = arith.addf %78, %83 : vector<32x128xf32>
    %85 = vector.broadcast %65 : vector<1x128xf32> to vector<32x128xf32>
    %86 = arith.addf %84, %85 : vector<32x128xf32>
    %cst_92 = arith.constant dense<0.000000e+00> : vector<128xf32>
    %87 = vector.multi_reduction <add>, %86, %cst_92 [0] : vector<32x128xf32> to vector<128xf32>
    %88 = vector.shape_cast %87 : vector<128xf32> to vector<1x128xf32>
    %89 = arith.mulf %86, %86 : vector<32x128xf32>
    %cst_93 = arith.constant dense<0.000000e+00> : vector<128xf32>
    %90 = vector.multi_reduction <add>, %89, %cst_93 [0] : vector<32x128xf32> to vector<128xf32>
    %91 = vector.shape_cast %90 : vector<128xf32> to vector<1x128xf32>
    %c0_94 = arith.constant 0 : index
    %c0_95 = arith.constant 0 : index
    %92 = vector.load %arg3[%c0_94, %c0_95] : memref<128x128xf32, #tpu.memory_space<vmem>>, vector<128x128xf32>
    %cst_96 = arith.constant dense<0.000000e+00> : vector<1x128xf32>
    %93 = tpu.matmul %88, %92, %cst_96 {dimension_numbers = #tpu.dot_dimension_numbers<[1], [0], [0], [1], [0, 0, 1, 1], [], []>} : vector<1x128xf32>, vector<128x128xf32>, vector<1x128xf32> -> vector<1x128xf32>
    %cst_97 = arith.constant 0.001953125 : f32
    %94 = vector.broadcast %cst_97 : f32 to vector<1x128xf32>
    %95 = arith.mulf %93, %94 : vector<1x128xf32>
    %c0_98 = arith.constant 0 : index
    %c0_99 = arith.constant 0 : index
    %96 = vector.load %arg3[%c0_98, %c0_99] : memref<128x128xf32, #tpu.memory_space<vmem>>, vector<128x128xf32>
    %cst_100 = arith.constant dense<0.000000e+00> : vector<1x128xf32>
    %97 = tpu.matmul %91, %96, %cst_100 {dimension_numbers = #tpu.dot_dimension_numbers<[1], [0], [0], [1], [0, 0, 1, 1], [], []>} : vector<1x128xf32>, vector<128x128xf32>, vector<1x128xf32> -> vector<1x128xf32>
    %cst_101 = arith.constant 0.001953125 : f32
    %98 = vector.broadcast %cst_101 : f32 to vector<1x128xf32>
    %99 = arith.mulf %97, %98 : vector<1x128xf32>
    %100 = arith.mulf %95, %95 : vector<1x128xf32>
    %101 = arith.subf %99, %100 : vector<1x128xf32>
    %cst_102 = arith.constant 9.99999974E-6 : f32
    %102 = vector.broadcast %cst_102 : f32 to vector<1x128xf32>
    %103 = arith.addf %101, %102 : vector<1x128xf32>
    %104 = math.rsqrt %103 : vector<1x128xf32>
    %105 = arith.mulf %66, %104 : vector<1x128xf32>
    %106 = arith.mulf %95, %105 : vector<1x128xf32>
    %107 = arith.subf %67, %106 : vector<1x128xf32>
    %108 = vector.broadcast %105 : vector<1x128xf32> to vector<32x128xf32>
    %109 = arith.mulf %86, %108 : vector<32x128xf32>
    %110 = vector.broadcast %107 : vector<1x128xf32> to vector<32x128xf32>
    %111 = arith.addf %109, %110 : vector<32x128xf32>
    %cst_103 = arith.constant 0.000000e+00 : f32
    %112 = vector.broadcast %cst_103 : f32 to vector<32x128xf32>
    %113 = arith.maximumf %111, %112 : vector<32x128xf32>
    %114 = vector.shape_cast %113 : vector<32x128xf32> to vector<2x16x128xf32>
    %c0_104 = arith.constant 0 : index
    %c0_105 = arith.constant 0 : index
    %c0_106 = arith.constant 0 : index
    %115 = vector.load %arg5[%c0_104, %c0_105, %c0_106] : memref<2x16x128xf32, #tpu.memory_space<vmem>>, vector<2x16x128xf32>
    tpu.vector_store %arg5[%c0_104, %c0_105, %c0_106], %114 {strides = array<i32>} : memref<2x16x128xf32, #tpu.memory_space<vmem>>, vector<2x16x128xf32>,
    return
  }
}

</mosaic_0001>

<bundles_post_ra>
// kernel: tpu_custom_call.1
= control target key start
LH: loop header
LB: loop body
LE: loop exit
PB: predicated region body
PF: predicated region fallthrough
CT: control target
= control target key end

     0   :  { %10 = vsyncpa [#allocation5], 0  ;;  %s1520_s0 = inlined_call_operand.hbm [shape: f32[2,16,64], index: 0, kind: input, shape index: {}]   ;;  %s1521_s1 = inlined_call_operand.hbm [shape: f32[3,72,128], index: 1, kind: input, shape index: {}]   ;;  %s1522_s2 = inlined_call_operand.hbm [shape: f32[3,144,128], index: 2, kind: input, shape index: {}]   ;;  %s1523_s3 = inlined_call_operand.hbm [shape: f32[128,128], index: 3, kind: input, shape index: {}]   ;;  %s1524_s4 = inlined_call_operand.hbm [shape: f32[8,128], index: 4, kind: input, shape index: {}]   ;;  %s1525_s5 = inlined_call_operand.hbm [shape: f32[2,16,128], index: 5, kind: output, shape index: {}]  }
   0x1   :  { %11 = vsyncpa [#allocation8], 0 }
   0x2   :  { %12 = vsyncpa [#allocation11], 0 }
   0x3   :  { %13 = vsyncpa [#allocation6], 0  ;;  %s31_s20 = sshll.u32 %s1521_s1, 4  ;;  %s1197_s21 = smov [#allocation7]   ;;  %s32_s20 = int_to_ptr.hbm [resolvable:$true] %s31_s20 }
   0x4   :  { %s33_s22 = sshll.u32 %s1197_s21, 4  ;;  %s57_s25 = sshll.u32 %s1523_s3, 4  ;;  %s34_s22 = int_to_ptr.vmem [resolvable:$true] %s33_s22  ;;  %s58_s25 = int_to_ptr.hbm [resolvable:$true] %s57_s25 }
   0x5   :  { %s1198_s26 = smov 128   ;;  %s1199_s27 = smov 8  }
   0x6   :  { %39 = dma.hbm_to_vmem [thread:$0]  %s32_s20, 3456, %s34_s22, [#allocation8], %s1198_s26, %s1198_s26, %s1199_s27  }
   0x7   :  { %s1200_s28 = smov [#allocation10]   ;;  %s18_s1 = sshll.u32 %s1520_s0, 4  ;;  %s19_s1 = int_to_ptr.hbm [resolvable:$true] %s18_s1 }
   0x8   :  { %s59_s29 = sshll.u32 %s1200_s28, 4  ;;  %s44_s8 = sshll.u32 %s1522_s2, 4  ;;  %s60_s29 = int_to_ptr.vmem [resolvable:$true] %s59_s29  ;;  %s45_s8 = int_to_ptr.hbm [resolvable:$true] %s44_s8 }
   0x9   :  { %65 = dma.hbm_to_vmem [thread:$0]  %s58_s25, 2048, %s60_s29, [#allocation11], %s1198_s26, %s1198_s26, %s1199_s27  }
   0xa   :  { %s1201_s9 = smov [#allocation4]   ;;  %s1202_s11 = smov [#allocation9]  }
   0xb   :  { %s20_s10 = sshll.u32 %s1201_s9, 4  ;;  %s46_s0 = sshll.u32 %s1202_s11, 4  ;;  %s21_s10 = int_to_ptr.vmem [resolvable:$true] %s20_s10  ;;  %s47_s0 = int_to_ptr.vmem [resolvable:$true] %s46_s0 }
   0xc   :  { %26 = dma.hbm_to_vmem [thread:$0]  %s19_s1, 512, %s21_s10, [#allocation5], %s1198_s26, %s1198_s26, %s1199_s27  }
   0xd   :  { %s71_s14 = sshll.u32 %s1524_s4, 4  ;;  %s1203_s2 = smov [#allocation12]   ;;  %s72_s14 = int_to_ptr.hbm [resolvable:$true] %s71_s14 }
   0xe   :  { %52 = dma.hbm_to_vmem [thread:$0]  %s45_s8, 6912, %s47_s0, [#allocation8], %s1198_s26, %s1198_s26, %s1199_s27  }
   0xf   :  { %s73_s15 = sshll.u32 %s1203_s2, 4  ;;  %s74_s15 = int_to_ptr.vmem [resolvable:$true] %s73_s15 }
  0x10   :  { %76 = dma.hbm_to_vmem [thread:$0]  %s72_s14, 128, %s74_s15, [#allocation11]  }
  0x11   :  { %1189 = dma.done.wait [#allocation5], 512  }
  0x12   :  { %1190 = vsyncadd [#allocation5], 4294966784 }
  0x13   :  { %1191 = dma.done.wait [#allocation8], 10368  }
  0x14   :  { %1192 = vsyncadd [#allocation8], 4294956928 }
  0x15   :  { %1193 = dma.done.wait [#allocation11], 2176  }
  0x16   :  { %1194 = vsyncadd [#allocation11], 4294965120  ;;  %vm101_vm0 = vcmask 31744   ;;  %vm109_vm1 = vcmask 589344   ;;  %v1204_v0 = vmov 0.0   ;;  %vm117_vm2 = vcmask 581632  }
  0x17   :  { %102 = vst.msk [vmem:[#allocation2] sm:$0xff] %vm101_vm0, %v1204_v0  ;;  %v97_v1 = vld [vmem:[#allocation4] sm:$0xff]  ;;  %v99_v2 = vld [vmem:[#allocation4 + $0x10] sm:$0xff]  ;;  %s1205_s4 = smov 4   ;;  %v172_v3 = vld [vmem:[#allocation7 + $0x88] sm:$0xff]  ;;  %vm104_vm3 = vcmask 25600  }
  0x18   :  { %103 = vst.msk [vmem:[#allocation2 + $0x8] sm:$0xff] %vm101_vm0, %v1204_v0  ;;  %126 = vrot.lane.b32.xlu0 %v97_v1, %s1205_s4  ;;  %130 = vrot.lane.b32.xlu1 %v99_v2, %s1205_s4  ;;  %v158_v4 = vld [vmem:[#allocation7 + $0x40] sm:$0xff]  ;;  %v157_v6 = vld [vmem:[#allocation7 + $0x38] sm:$0xff]  ;;  %v156_v8 = vld [vmem:[#allocation7 + $0x30] sm:$0xff]  ;;  %vm112_vm4 = vcmask 583200   ;;  %vm138_vm5 = vcmask 556064  }
  0x19   :  { %110 = vst.msk [vmem:[#allocation2] sm:$0xff] %vm109_vm1, %v1204_v0  ;;  %193 = vmatpush.msra.mxu0 %v172_v3  ;;  %234 = vmatpush.msra.mxu1 %v158_v4  ;;  %v171_v5 = vld [vmem:[#allocation7 + $0x80] sm:$0xff]  ;;  %v170_v7 = vld [vmem:[#allocation7 + $0x78] sm:$0xff]  ;;  %v169_v9 = vld [vmem:[#allocation7 + $0x70] sm:$0xff]  ;;  %vm173_vm6 = vcmask 588800   ;;  %vm430_vm10 = vcmask 64512  }
  0x1a   :  { %111 = vst.msk [vmem:[#allocation2 + $0x8] sm:$0xff] %vm109_vm1, %v1204_v0  ;;  %v269_v10 = vld [vmem:[#allocation7 + $0xd0] sm:$0xff]  ;;  %v155_v11 = vld [vmem:[#allocation7 + $0x28] sm:$0xff]  ;;  %v100_v13 = vld [vmem:[#allocation4 + $0x18] sm:$0xff]  ;;  %vm438_vm11 = vcmask 130112   ;;  %vm465_vm13 = vcmask 1040384  }
  0x1b   :  { %118 = vst.msk [vmem:[#allocation2] sm:$0x1] %vm117_vm2, %v1204_v0  ;;  %194 = vmatpush.msra.mxu0 %v171_v5  ;;  %235 = vmatpush.msra.mxu1 %v157_v6  ;;  %v98_v12 = vld [vmem:[#allocation4 + $0x8] sm:$0xff]  ;;  %v154_v15 = vld [vmem:[#allocation7 + $0x20] sm:$0xff]  ;;  %v153_v17 = vld [vmem:[#allocation7 + $0x18] sm:$0xff]  ;;  %vm433_vm14 = vcmask 58368  }
  0x1c   :  { %106 = vst.msk [vmem:[#allocation2 + $0x18] sm:$0xff] %vm101_vm0, %v1204_v0  ;;  %289 = vmatpush.msra.mxu2 %v269_v10  ;;  %v168_v14 = vld [vmem:[#allocation7 + $0x68] sm:$0xff]  ;;  %v167_v16 = vld [vmem:[#allocation7 + $0x60] sm:$0xff]  ;;  %v166_v19 = vld [vmem:[#allocation7 + $0x58] sm:$0xff]  ;;  %vm441_vm15 = vcmask 123968   ;;  %s1206_s16 = smov [#allocation13]  }
  0x1d   :  { %107 = vst.msk [vmem:[#allocation2 + $0x20] sm:$0xff] %vm101_vm0, %v1204_v0  ;;  %195 = vmatpush.msra.mxu0 %v170_v7  ;;  %236 = vmatpush.msra.mxu1 %v156_v8  ;;  %v268_v18 = vld [vmem:[#allocation7 + $0xc8] sm:$0xff]  ;;  %v152_v20 = vld [vmem:[#allocation7 + $0x10] sm:$0xff]  ;;  %v267_v21 = vld [vmem:[#allocation7 + $0xc0] sm:$0xff]  ;;  %vm490_vm0 = vcmask 1047617   ;;  %s988_s17 = sshll.u32 %s1206_s16, 4  ;;  %s989_s17 = int_to_ptr.vmem [resolvable:$true] %s988_s17 }
  0x1e   :  { %114 = vst.msk [vmem:[#allocation2 + $0x18] sm:$0xff] %vm109_vm1, %v1204_v0  ;;  %290 = vmatpush.msra.mxu2 %v268_v18  ;;  %v165_v22 = vld [vmem:[#allocation7 + $0x50] sm:$0xff]  ;;  %v151_v23 = vld [vmem:[#allocation7 + $0x8] sm:$0xff]  ;;  %v266_v24 = vld [vmem:[#allocation7 + $0xb8] sm:$0xff]  ;;  %s990_s20 = sshll.u32 %s1525_s5, 4  ;;  %s991_s20 = int_to_ptr.hbm [resolvable:$true] %s990_s20 }
  0x1f   :  { %115 = vst.msk [vmem:[#allocation2 + $0x20] sm:$0xff] %vm109_vm1, %v1204_v0  ;;  %196 = vmatpush.msra.mxu0 %v169_v9  ;;  %237 = vmatpush.msra.mxu1 %v155_v11  ;;  %v164_v25 = vld [vmem:[#allocation7 + $0x48] sm:$0xff]  ;;  %v150_v26 = vld [vmem:[#allocation7] sm:$0xff]  ;;  %v265_v27 = vld [vmem:[#allocation7 + $0xb0] sm:$0xff]  ;;  %vm492_vm1 = vcmask 64513  }
  0x20   :  { %119 = vst.msk [vmem:[#allocation2 + $0x18] sm:$0x1] %vm117_vm2, %v1204_v0  ;;  %128 = vrot.lane.b32.xlu0 %v98_v12, %s1205_s4  ;;  %132 = vrot.lane.b32.xlu1 %v100_v13, %s1205_s4  ;;  %v264_v28 = vld [vmem:[#allocation7 + $0xa8] sm:$0xff]  ;;  %v263_v29 = vld [vmem:[#allocation7 + $0xa0] sm:$0xff]  ;;  %v262_v30 = vld [vmem:[#allocation7 + $0x98] sm:$0xff] }
  0x21   :  { %197 = vmatpush.msra.mxu0 %v168_v14  ;;  %238 = vmatpush.msra.mxu1 %v154_v15  ;;  %105 = vst.msk [vmem:[#allocation2 + $0x10] sm:$0x3] %vm104_vm3, %v1204_v0  ;;  %v261_v31 = vld [vmem:[#allocation7 + $0x90] sm:$0xff]  ;;  %v1304_v48 = vld [vmem:[#allocation10 + $0x78] sm:$0xff]  ;;  %v1308_v49 = vld [vmem:[#allocation10 + $0x70] sm:$0xff] }
  0x22   :  { %113 = vst.msk [vmem:[#allocation2 + $0x10] sm:$0x3] %vm112_vm4, %v1204_v0  ;;  %291 = vmatpush.msra.mxu2 %v267_v21  ;;  %358 = vmatpush.msra.mxu3 %v1304_v48  ;;  %v1312_v50 = vld [vmem:[#allocation10 + $0x68] sm:$0xff]  ;;  %v1316_v51 = vld [vmem:[#allocation10 + $0x60] sm:$0xff]  ;;  %v1320_v52 = vld [vmem:[#allocation10 + $0x58] sm:$0xff] }
  0x23   :  { %198 = vmatpush.msra.mxu0 %v167_v16  ;;  %239 = vmatpush.msra.mxu1 %v153_v17  ;;  %120 = vst.msk [vmem:[#allocation2 + $0x11] sm:$0x1] %vm117_vm2, %v1204_v0  ;;  %v1324_v54 = vld [vmem:[#allocation10 + $0x50] sm:$0xff]  ;;  %v1328_v56 = vld [vmem:[#allocation10 + $0x48] sm:$0xff]  ;;  %v1332_v57 = vld [vmem:[#allocation10 + $0x40] sm:$0xff] }
  0x24   :  { %108 = vst.msk [vmem:[#allocation2 + $0x28] sm:$0x3] %vm104_vm3, %v1204_v0  ;;  %292 = vmatpush.msra.mxu2 %v266_v24  ;;  %359 = vmatpush.msra.mxu3 %v1308_v49  ;;  %v1336_v58 = vld [vmem:[#allocation10 + $0x38] sm:$0xff]  ;;  %v1340_v59 = vld [vmem:[#allocation10 + $0x30] sm:$0xff]  ;;  %v1344_v61 = vld [vmem:[#allocation10 + $0x28] sm:$0xff]  ;;  %vm600_vm3 = vcmask 130048  }
  0x25   :  { %199 = vmatpush.msra.mxu0 %v166_v19  ;;  %240 = vmatpush.msra.mxu1 %v152_v20  ;;  %116 = vst.msk [vmem:[#allocation2 + $0x28] sm:$0x3] %vm112_vm4, %v1204_v0  ;;  %v1346_v62 = vld [vmem:[#allocation10 + $0x20] sm:$0xff]  ;;  %v1350_v2 = vld [vmem:[#allocation10 + $0x18] sm:$0xff]  ;;  %v1354_v3 = vld [vmem:[#allocation10 + $0x10] sm:$0xff]  ;;  %vm556_vm4 = vcmask 1046528  }
  0x26   :  { %121 = vst.msk [vmem:[#allocation2 + $0x29] sm:$0x1] %vm117_vm2, %v1204_v0  ;;  %293 = vmatpush.msra.mxu2 %v265_v27  ;;  %360 = vmatpush.msra.mxu3 %v1312_v50  ;;  %v1358_v4 = vld [vmem:[#allocation10 + $0x8] sm:$0xff]  ;;  %v1362_v5 = vld [vmem:[#allocation10] sm:$0xff]  ;;  %vm494_vm2 = vcmask 1047616  }
  0x27   :  { %200 = vmatpush.msra.mxu0 %v165_v22  ;;  %241 = vmatpush.msra.mxu1 %v151_v23  ;;  %v1039_v15 = vld [vmem:[#allocation12] ss:$0 sm:$0xff]  ;;  %431 = vst.msk [vmem:[#allocation3] sm:$0xff] %vm430_vm10, %v1204_v0 }
  0x28   :  { %294 = vmatpush.msra.mxu2 %v264_v28  ;;  %361 = vmatpush.msra.mxu3 %v1316_v51  ;;  %439 = vst.msk [vmem:[#allocation3 + $0x8] sm:$0xff] %vm438_vm11, %v1204_v0 }
  0x29   :  { %201 = vmatpush.msra.mxu0 %v164_v25  ;;  %242 = vmatpush.msra.mxu1 %v150_v26  ;;  %432 = vst.msk [vmem:[#allocation3 + $0x10] sm:$0xff] %vm430_vm10, %v1204_v0 }
  0x2a   :  { %295 = vmatpush.msra.mxu2 %v263_v29  ;;  %362 = vmatpush.msra.mxu3 %v1320_v52  ;;  %435 = vst.msk [vmem:[#allocation3 + $0x30] sm:$0xff] %vm430_vm10, %v1204_v0 }
  0x2b   :  { %379 = vmatpush.msrb.mxu0 %v1304_v48  ;;  %436 = vst.msk [vmem:[#allocation3 + $0x40] sm:$0xff] %vm430_vm10, %v1204_v0 }
  0x2c   :  { %296 = vmatpush.msra.mxu2 %v262_v30  ;;  %363 = vmatpush.msra.mxu3 %v1324_v54  ;;  %440 = vst.msk [vmem:[#allocation3 + $0x18] sm:$0xff] %vm438_vm11, %v1204_v0 }
  0x2d   :  { %380 = vmatpush.msrb.mxu0 %v1308_v49  ;;  %443 = vst.msk [vmem:[#allocation3 + $0x38] sm:$0xff] %vm438_vm11, %v1204_v0 }
  0x2e   :  { %297 = vmatpush.msra.mxu2 %v261_v31  ;;  %364 = vmatpush.msra.mxu3 %v1328_v56  ;;  %444 = vst.msk [vmem:[#allocation3 + $0x48] sm:$0xff] %vm438_vm11, %v1204_v0 }
  0x2f   :  { %381 = vmatpush.msrb.mxu0 %v1312_v50  ;;  %434 = vst.msk [vmem:[#allocation3 + $0x20] sm:$0x3] %vm433_vm14, %v1204_v0 }
  0x30   :  { %365 = vmatpush.msra.mxu3 %v1332_v57  ;;  %442 = vst.msk [vmem:[#allocation3 + $0x28] sm:$0x3] %vm441_vm15, %v1204_v0 }
  0x31   :  { %382 = vmatpush.msrb.mxu0 %v1316_v51  ;;  %437 = vst.msk [vmem:[#allocation3 + $0x50] sm:$0x3] %vm433_vm14, %v1204_v0 }
  0x32   :  { %366 = vmatpush.msra.mxu3 %v1336_v58  ;;  %445 = vst.msk [vmem:[#allocation3 + $0x58] sm:$0x3] %vm441_vm15, %v1204_v0 }
  0x33   :  { %383 = vmatpush.msrb.mxu0 %v1320_v52 }
  0x34   :  { %367 = vmatpush.msra.mxu3 %v1340_v59 }
  0x35   :  { %384 = vmatpush.msrb.mxu0 %v1324_v54 }
  0x36   :  { %368 = vmatpush.msra.mxu3 %v1344_v61 }
  0x37   :  { %385 = vmatpush.msrb.mxu0 %v1328_v56 }
  0x38   :  { %369 = vmatpush.msra.mxu3 %v1346_v62 }
  0x39   :  { %386 = vmatpush.msrb.mxu0 %v1332_v57 }
  0x3a   :  { %370 = vmatpush.msra.mxu3 %v1350_v2 }
  0x3b   :  { %387 = vmatpush.msrb.mxu0 %v1336_v58 }
  0x3c   :  { %371 = vmatpush.msra.mxu3 %v1354_v3 }
  0x3d   :  { %388 = vmatpush.msrb.mxu0 %v1340_v59 }
  0x3e   :  { %372 = vmatpush.msra.mxu3 %v1358_v4 }
  0x3f   :  { %389 = vmatpush.msrb.mxu0 %v1344_v61 }
  0x40   :  { %373 = vmatpush.msra.mxu3 %v1362_v5 }
  0x41   :  { %390 = vmatpush.msrb.mxu0 %v1346_v62 }
  0x43   :  { %391 = vmatpush.msrb.mxu0 %v1350_v2 }
  0x45   :  { %392 = vmatpush.msrb.mxu0 %v1354_v3 }
  0x47   :  { %393 = vmatpush.msrb.mxu0 %v1358_v4 }
  0x49   :  { %394 = vmatpush.msrb.mxu0 %v1362_v5 }
  0x8a   :  { %v127_v32 = vpop.permute.xlu0 %126  ;;  %v131_v33 = vpop.permute.xlu1 %130 }
  0x8b   :  { %139 = vst.msk [vmem:[#allocation2 + $0x1] sm:$0xff] %vm138_vm5, %v127_v32 }
  0x8c   :  { %141 = vst.msk [vmem:[#allocation2 + $0x19] sm:$0xff] %vm138_vm5, %v131_v33 }
  0x92   :  { %v129_v34 = vpop.permute.xlu0 %128  ;;  %v159_v35 = vld [vmem:[#allocation2 + $0x1] sm:$0xff]  ;;  %v133_v37 = vpop.permute.xlu1 %132 }
  0x93   :  { %v146_v36 = vld [vmem:[#allocation2] sm:$0xff]  ;;  %140 = vst.msk [vmem:[#allocation2 + $0x9] sm:$0xff] %vm138_vm5, %v129_v34  ;;  %1005 = vmatmul.msk.f32.vlgmr.msra.gmra.mxu0 %vm173_vm6, %v159_v35  ;;  %v148_v42 = vld [vmem:[#allocation2 + $0x18] sm:$0xff] }
  0x94   :  { %1009 = vmatmul.msk.f32.vlgmr.msra.gmra.mxu1 %vm173_vm6, %v146_v36  ;;  %142 = vst.msk [vmem:[#allocation2 + $0x21] sm:$0xff] %vm138_vm5, %v133_v37  ;;  %v161_v41 = vld [vmem:[#allocation2 + $0x19] sm:$0xff]  ;;  %vm497_vm5 = vcmask 1040448  }
  0x9a   :  { %v160_v38 = vld [vmem:[#allocation2 + $0x9] sm:$0xff] }
  0x9b   :  { %v147_v39 = vld [vmem:[#allocation2 + $0x8] sm:$0xff]  ;;  %1006 = vmatmul.msk.f32.gmra.mxu0 %vm173_vm6, %v160_v38  ;;  %v149_v45 = vld [vmem:[#allocation2 + $0x20] sm:$0xff] }
  0x9c   :  { %v256_v40 = vld [vmem:[#allocation2 + $0x2] sm:$0xff]  ;;  %1010 = vmatmul.msk.f32.gmra.mxu1 %vm173_vm6, %v147_v39  ;;  %v257_v43 = vld [vmem:[#allocation2 + $0xa] sm:$0xff]  ;;  %v258_v46 = vld [vmem:[#allocation2 + $0x1a] sm:$0xff] }
  0x9d   :  { %1013 = vmatmul.msk.f32.vlgmr.msra.gmra.mxu2 %vm173_vm6, %v256_v40  ;;  %v162_v44 = vld [vmem:[#allocation2 + $0x21] sm:$0xff] }
  0x9e   :  { %v259_v47 = vld [vmem:[#allocation2 + $0x22] sm:$0xff] }
  0xa3   :  { %1007 = vmatmul.msk.f32.gmra.mxu0 %vm173_vm6, %v161_v41 }
  0xa4   :  { %1011 = vmatmul.msk.f32.gmra.mxu1 %vm173_vm6, %v148_v42 }
  0xa5   :  { %1014 = vmatmul.msk.f32.gmra.mxu2 %vm173_vm6, %v257_v43 }
  0xab   :  { %1008 = vmatmul.msk.f32.gmra.mxu0 %vm173_vm6, %v162_v44 }
  0xac   :  { %1012 = vmatmul.msk.f32.gmra.mxu1 %vm173_vm6, %v149_v45 }
  0xad   :  { %1015 = vmatmul.msk.f32.gmra.mxu2 %vm173_vm6, %v258_v46 }
  0xb5   :  { %1016 = vmatmul.msk.f32.gmra.mxu2 %vm173_vm6, %v259_v47  ;;  %vm499_vm6 = vcmask 57344  }
 0x110   :  { %v203_v53 = vpop.f32.mrf.mxu0 }
 0x111   :  { %v244_v55 = vpop.f32.mrf.mxu1 }
 0x112   :  { %v245_v10 = vadd.f32 %v244_v55, %v203_v53 }
 0x118   :  { %v206_v60 = vpop.f32.mrf.mxu0 }
 0x119   :  { %v247_v63 = vpop.f32.mrf.mxu1 }
 0x11a   :  { %v248_v9 = vadd.f32 %v247_v63, %v206_v60 }
 0x120   :  { %v299_v1 = vpop.f32.mrf.mxu2  ;;  %v209_v7 = vpop.f32.mrf.mxu0 }
 0x121   :  { %v250_v8 = vpop.f32.mrf.mxu1  ;;  %v311_v14 = vadd.f32 %v299_v1, %v245_v10 }
 0x122   :  { %v251_v11 = vadd.f32 %v250_v8, %v209_v7 }
 0x123   :  { %v1370_v20 = vadd.f32 %v1039_v15, %v311_v14 }
 0x125   :  { %v329_v25 = vmul.f32 %v1370_v20, %v1370_v20 }
 0x128   :  { %v302_v6 = vpop.f32.mrf.mxu2  ;;  %v212_v18 = vpop.f32.mrf.mxu0 }
 0x129   :  { %v312_v12 = vadd.f32 %v302_v6, %v248_v9  ;;  %v253_v19 = vpop.f32.mrf.mxu1 }
 0x12a   :  { %v254_v23 = vadd.f32 %v253_v19, %v212_v18  ;;  %v532_v18 = vld [vmem:[#allocation9 + $0x70] sm:$0xff]  ;;  %v446_v19 = vlaneseq }
 0x12b   :  { %v1368_v17 = vadd.f32 %v1039_v15, %v312_v12 }
 0x12c   :  { %vm1392_vm12 = vcmp.lt.s32.totalorder %v446_v19, 144  ;;  %v535_v19 = vld [vmem:[#allocation9 + $0x88] sm:$0xff] }
 0x12d   :  { %v330_v22 = vmul.f32 %v1368_v17, %v1368_v17  ;;  %v320_v26 = vadd.f32 %v1368_v17, %v1370_v20  ;;  %450 = vst.msk [vmem:[#allocation3] ss:$8 sm:$0x3] %vm1392_vm12, %v1204_v0  ;;  %720 = vmatpush.msra.mxu0 %v535_v19 }
 0x12e   :  { %453 = vst.msk [vmem:[#allocation3 + $0x30] ss:$8 sm:$0x3] %vm1392_vm12, %v1204_v0 }
 0x12f   :  { %v333_v29 = vadd.f32 %v330_v22, %v329_v25  ;;  %v597_v25 = vld [vmem:[#allocation9 + $0x108] sm:$0xff]  ;;  %456 = vst.msk [vmem:[#allocation3 + $0x21] ss:$8 sm:$0x3] %vm1392_vm12, %v1204_v0 }
 0x130   :  { %v305_v13 = vpop.f32.mrf.mxu2  ;;  %609 = vmatpush.msrb.mxu1 %v597_v25  ;;  %v518_v25 = vld [vmem:[#allocation9] sm:$0xff]  ;;  %459 = vst.msk [vmem:[#allocation3 + $0x51] ss:$8 sm:$0x3] %vm1392_vm12, %v1204_v0  ;;  %v788_v0 = vld [vmem:[#allocation9 + $0x178] sm:$0xff] }
 0x131   :  { %v313_v16 = vadd.f32 %v305_v13, %v251_v11  ;;  %v144_v13 = vld [vmem:[#allocation12 + $0x1] sm:$0x1] }
 0x133   :  { %v1372_v21 = vadd.f32 %v1039_v15, %v313_v16  ;;  %v533_v16 = vld [vmem:[#allocation9 + $0x78] sm:$0xff] }
 0x134   :  { %677 = vmatpush.msrb.mxu2 %v533_v16  ;;  %v520_v16 = vld [vmem:[#allocation9 + $0x10] sm:$0xff] }
 0x135   :  { %v331_v27 = vmul.f32 %v1372_v21, %v1372_v21  ;;  %v321_v30 = vadd.f32 %v320_v26, %v1372_v21  ;;  %v784_v26 = vld [vmem:[#allocation9 + $0x158] sm:$0xff] }
 0x136   :  { %678 = vmatpush.msrb.mxu2 %v532_v18  ;;  %v589_v18 = vld [vmem:[#allocation9 + $0xc8] sm:$0xff] }
 0x137   :  { %v334_v32 = vadd.f32 %v333_v29, %v331_v27  ;;  %v596_v29 = vld [vmem:[#allocation9 + $0x100] sm:$0xff] }
 0x138   :  { %v308_v24 = vpop.f32.mrf.mxu2  ;;  %610 = vmatpush.msrb.mxu1 %v596_v29  ;;  %v585_v29 = vld [vmem:[#allocation9 + $0xa8] sm:$0xff] }
 0x139   :  { %v314_v28 = vadd.f32 %v308_v24, %v254_v23  ;;  %v145_v23 = vld [vmem:[#allocation12 + $0x2] sm:$0x1]  ;;  %v531_v24 = vld [vmem:[#allocation9 + $0x68] sm:$0xff] }
 0x13a   :  { %679 = vmatpush.msrb.mxu2 %v531_v24  ;;  %v588_v24 = vld [vmem:[#allocation9 + $0xc0] sm:$0xff] }
 0x13b   :  { %v1383_v31 = vadd.f32 %v1039_v15, %v314_v28 }
 0x13d   :  { %v322_v33 = vadd.f32 %v321_v30, %v1383_v31  ;;  %v332_v34 = vmul.f32 %v1383_v31, %v1383_v31  ;;  %v530_v30 = vld [vmem:[#allocation9 + $0x60] sm:$0xff] }
 0x13e   :  { %680 = vmatpush.msrb.mxu2 %v530_v30  ;;  %v584_v30 = vld [vmem:[#allocation9 + $0xa0] sm:$0xff] }
 0x13f   :  { %v335_v35 = vadd.f32 %v334_v32, %v332_v34  ;;  %v323_v36 = vrot.slane %v322_v33, 4  ;;  %v529_v34 = vld [vmem:[#allocation9 + $0x58] sm:$0xff] }
 0x140   :  { %681 = vmatpush.msrb.mxu2 %v529_v34  ;;  %v598_v34 = vld [vmem:[#allocation9 + $0x110] sm:$0xff] }
 0x141   :  { %v324_v37 = vadd.f32 %v323_v36, %v322_v33  ;;  %v336_v38 = vrot.slane %v335_v35, 4  ;;  %v595_v33 = vld [vmem:[#allocation9 + $0xf8] sm:$0xff] }
 0x142   :  { %611 = vmatpush.msrb.mxu1 %v595_v33  ;;  %v599_v33 = vld [vmem:[#allocation9 + $0x118] sm:$0xff] }
 0x143   :  { %v325_v39 = vrot.slane %v324_v37, 2  ;;  %v337_v40 = vadd.f32 %v336_v38, %v335_v35  ;;  %652 = vmatpush.msrb.mxu3 %v599_v33 }
 0x145   :  { %v326_v41 = vadd.f32 %v325_v39, %v324_v37  ;;  %v338_v42 = vrot.slane %v337_v40, 2  ;;  %v594_v39 = vld [vmem:[#allocation9 + $0xf0] sm:$0xff]  ;;  %653 = vmatpush.msrb.mxu3 %v598_v34 }
 0x146   :  { %612 = vmatpush.msrb.mxu1 %v594_v39  ;;  %v782_v39 = vld [vmem:[#allocation9 + $0x148] sm:$0xff] }
 0x147   :  { %v327_v43 = vrot.slane %v326_v41, 1  ;;  %v339_v44 = vadd.f32 %v338_v42, %v337_v40  ;;  %v528_v40 = vld [vmem:[#allocation9 + $0x50] sm:$0xff] }
 0x148   :  { %682 = vmatpush.msrb.mxu2 %v528_v40 }
 0x149   :  { %v328_v45 = vadd.f32 %v327_v43, %v326_v41  ;;  %v340_v46 = vrot.slane %v339_v44, 1 }
 0x14b   :  { %374 = vmatmul.f32.vlgmr.msra.gmra.mxu3 %v328_v45  ;;  %v341_v47 = vadd.f32 %v340_v46, %v339_v44  ;;  %v593_v44 = vld [vmem:[#allocation9 + $0xe8] sm:$0xff] }
 0x14c   :  { %613 = vmatpush.msrb.mxu1 %v593_v44 }
 0x14d   :  { %395 = vmatmul.f32.vlgmr.msrb.gmra.mxu0 %v341_v47  ;;  %v592_v47 = vld [vmem:[#allocation9 + $0xe0] sm:$0xff] }
 0x14e   :  { %614 = vmatpush.msrb.mxu1 %v592_v47  ;;  %v779_v47 = vld [vmem:[#allocation9 + $0x130] sm:$0xff] }
 0x1ca   :  { %v396_v53 = vpop.f32.mrf.mxu0 }
 0x1cb   :  { %v399_v63 = vmul.f32 0.001953125, %v396_v53 }
 0x1ce   :  { %v375_v55 = vpop.f32.mrf.mxu3 }
 0x1cf   :  { %v378_v60 = vmul.f32 0.001953125, %v375_v55 }
 0x1d1   :  { %v400_v1 = vmul.f32 %v378_v60, %v378_v60 }
 0x1d3   :  { %v401_v6 = vsub.f32 %v399_v63, %v400_v1  ;;  %v526_v1 = vld [vmem:[#allocation9 + $0x40] sm:$0xff] }
 0x1d5   :  { %v402_v7 = vadd.f32 1e-05, %v401_v6 }
 0x1d7   :  { %1041 = vrsqrt.f32 %v402_v7  ;;  %vm409_vm8 = vweird.f32 %v402_v7 }
 0x1dd   :  { %v1042_v8 = vpop.eup %1041 }
 0x1de   :  { %v404_v9 = vmul.f32 %v1042_v8, %v402_v7  ;;  %vm410_vm7 = vweird.f32 %v1042_v8  ;;  %v524_v7 = vld [vmem:[#allocation9 + $0x30] sm:$0xff] }
 0x1df   :  { %vm411_vm9 = vmor %vm409_vm8, %vm410_vm7  ;;  %vm751_vm7 = vcmask 1045504  }
 0x1e0   :  { %v405_v10 = vmul.f32 %v1042_v8, %v404_v9 }
 0x1e2   :  { %v406_v11 = vmul.f32 0.5, %v405_v10  ;;  %v522_v10 = vld [vmem:[#allocation9 + $0x20] sm:$0xff] }
 0x1e4   :  { %v407_v12 = vsub.f32 1.5, %v406_v11 }
 0x1e6   :  { %v408_v14 = vmul.f32 %v1042_v8, %v407_v12 }
 0x1e8   :  { %v412_v15 = vsel %vm411_vm9, %v1042_v8, %v408_v14  ;;  %v523_v8 = vld [vmem:[#allocation9 + $0x28] sm:$0xff]  ;;  %v521_v14 = vld [vmem:[#allocation9 + $0x18] sm:$0xff] }
 0x1e9   :  { %v413_v22 = vmul.f32 %v412_v15, %v144_v13  ;;  %v591_v13 = vld [vmem:[#allocation9 + $0xd8] sm:$0xff]  ;;  %v590_v15 = vld [vmem:[#allocation9 + $0xd0] sm:$0xff] }
 0x1ea   :  { %615 = vmatpush.msrb.mxu1 %v591_v13 }
 0x1eb   :  { %v414_v27 = vmul.f32 %v413_v22, %v378_v60  ;;  %v416_v28 = vperm.slane %v413_v22, 0  ;;  %v519_v22 = vld [vmem:[#allocation9 + $0x8] sm:$0xff] }
 0x1ec   :  { %616 = vmatpush.msrb.mxu1 %v590_v15 }
 0x1ed   :  { %v415_v32 = vsub.f32 %v145_v23, %v414_v27  ;;  %v419_v36 = vmul.f32 %v416_v28, %v1372_v21  ;;  %v418_v37 = vmul.f32 %v416_v28, %v1368_v17  ;;  %v417_v38 = vmul.f32 %v416_v28, %v1370_v20  ;;  %v527_v21 = vld [vmem:[#allocation9 + $0x48] sm:$0xff]  ;;  %v534_v23 = vld [vmem:[#allocation9 + $0x80] sm:$0xff]  ;;  %v587_v27 = vld [vmem:[#allocation9 + $0xb8] sm:$0xff] }
 0x1ee   :  { %v420_v46 = vmul.f32 %v416_v28, %v1383_v31  ;;  %683 = vmatpush.msrb.mxu2 %v527_v21  ;;  %v525_v31 = vld [vmem:[#allocation9 + $0x38] sm:$0xff]  ;;  %617 = vmatpush.msrb.mxu1 %v589_v18  ;;  %v586_v28 = vld [vmem:[#allocation9 + $0xb0] sm:$0xff]  ;;  %v781_v21 = vld [vmem:[#allocation9 + $0x140] sm:$0xff] }
 0x1ef   :  { %v421_v35 = vperm.slane %v415_v32, 0  ;;  %721 = vmatpush.msra.mxu0 %v534_v23  ;;  %v583_v32 = vld [vmem:[#allocation9 + $0x98] sm:$0xff] }
 0x1f0   :  { %684 = vmatpush.msrb.mxu2 %v526_v1  ;;  %618 = vmatpush.msrb.mxu1 %v588_v24 }
 0x1f1   :  { %v424_v41 = vadd.f32 %v421_v35, %v419_v36  ;;  %v423_v42 = vadd.f32 %v421_v35, %v418_v37  ;;  %v422_v43 = vadd.f32 %v421_v35, %v417_v38  ;;  %v425_v63 = vadd.f32 %v421_v35, %v420_v46  ;;  %929 = vmatpush.msrb.mxu0 %v1304_v48  ;;  %v793_v36 = vld [vmem:[#allocation9 + $0x1a0] sm:$0xff] }
 0x1f2   :  { %685 = vmatpush.msrb.mxu2 %v525_v31  ;;  %619 = vmatpush.msrb.mxu1 %v587_v27 }
 0x1f3   :  { %v428_v17 = vmax.f32 %v424_v41, 0.0  ;;  %v427_v20 = vmax.f32 %v423_v42, 0.0  ;;  %v426_v45 = vmax.f32 %v422_v43, 0.0  ;;  %v429_v6 = vmax.f32 %v425_v63, 0.0  ;;  %930 = vmatpush.msrb.mxu0 %v1308_v49 }
 0x1f4   :  { %686 = vmatpush.msrb.mxu2 %v524_v7  ;;  %620 = vmatpush.msrb.mxu1 %v586_v28 }
 0x1f5   :  { %v469_v53 = vrot.slane %v428_v17, 7  ;;  %v467_v55 = vrot.slane %v427_v20, 7  ;;  %v466_v60 = vrot.slane %v426_v45, 7  ;;  %v470_v9 = vrot.slane %v429_v6, 7  ;;  %931 = vmatpush.msrb.mxu0 %v1312_v50  ;;  %v780_v20 = vld [vmem:[#allocation9 + $0x138] sm:$0xff] }
 0x1f6   :  { %687 = vmatpush.msrb.mxu2 %v523_v8  ;;  %621 = vmatpush.msrb.mxu1 %v585_v29 }
 0x1f7   :  { %478 = vrot.lane.b32.xlu1 %v469_v53, %s1199_s27  ;;  %476 = vrot.lane.b32.xlu0 %v467_v55, %s1199_s27  ;;  %v468_v11 = vsel %vm465_vm13, %v466_v60, %v467_v55  ;;  %v471_v12 = vsel %vm465_vm13, %v469_v53, %v470_v9  ;;  %v778_v53 = vld [vmem:[#allocation9 + $0x128] sm:$0xff]  ;;  %v777_v55 = vld [vmem:[#allocation9 + $0x120] sm:$0xff] }
 0x1f8   :  { %472 = vrot.lane.b32.xlu2 %v466_v60, %s1199_s27  ;;  %688 = vmatpush.msrb.mxu2 %v522_v10 }
 0x1f9   :  { %932 = vmatpush.msrb.mxu0 %v1316_v51  ;;  %622 = vmatpush.msrb.mxu1 %v584_v30 }
 0x1fa   :  { %689 = vmatpush.msrb.mxu2 %v521_v14 }
 0x1fb   :  { %933 = vmatpush.msrb.mxu0 %v1320_v52  ;;  %623 = vmatpush.msrb.mxu1 %v583_v32 }
 0x1fc   :  { %690 = vmatpush.msrb.mxu2 %v520_v16 }
 0x1fd   :  { %934 = vmatpush.msrb.mxu0 %v1324_v54 }
 0x1fe   :  { %691 = vmatpush.msrb.mxu2 %v519_v22 }
 0x1ff   :  { %482 = vrot.lane.b32.xlu0 %v470_v9, %s1199_s27  ;;  %935 = vmatpush.msrb.mxu0 %v1328_v56 }
 0x200   :  { %474 = vrot.lane.b32.xlu2 %v468_v11, %s1199_s27  ;;  %692 = vmatpush.msrb.mxu2 %v518_v25 }
 0x201   :  { %936 = vmatpush.msrb.mxu0 %v1332_v57 }
 0x202   :  { %908 = vmatpush.msra.mxu2 %v1304_v48  ;;  %v582_v48 = vld [vmem:[#allocation9 + $0x90] sm:$0xff] }
 0x203   :  { %624 = vmatpush.msrb.mxu1 %v582_v48  ;;  %937 = vmatpush.msrb.mxu0 %v1336_v58 }
 0x204   :  { %909 = vmatpush.msra.mxu2 %v1308_v49  ;;  %v792_v49 = vld [vmem:[#allocation9 + $0x198] sm:$0xff] }
 0x205   :  { %938 = vmatpush.msrb.mxu0 %v1340_v59  ;;  %803 = vmatpush.msra.mxu3 %v792_v49 }
 0x206   :  { %910 = vmatpush.msra.mxu2 %v1312_v50  ;;  %v791_v50 = vld [vmem:[#allocation9 + $0x190] sm:$0xff] }
 0x207   :  { %939 = vmatpush.msrb.mxu0 %v1344_v61  ;;  %804 = vmatpush.msra.mxu3 %v791_v50 }
 0x208   :  { %480 = vrot.lane.b32.xlu2 %v471_v12, %s1199_s27  ;;  %911 = vmatpush.msra.mxu2 %v1316_v51  ;;  %v790_v51 = vld [vmem:[#allocation9 + $0x188] sm:$0xff] }
 0x209   :  { %940 = vmatpush.msrb.mxu0 %v1346_v62  ;;  %805 = vmatpush.msra.mxu3 %v790_v51 }
 0x20a   :  { %912 = vmatpush.msra.mxu2 %v1320_v52 }
 0x20b   :  { %941 = vmatpush.msrb.mxu0 %v1350_v2 }
 0x20c   :  { %913 = vmatpush.msra.mxu2 %v1324_v54  ;;  %v789_v54 = vld [vmem:[#allocation9 + $0x180] sm:$0xff] }
 0x20d   :  { %942 = vmatpush.msrb.mxu0 %v1354_v3  ;;  %806 = vmatpush.msra.mxu3 %v789_v54 }
 0x20e   :  { %914 = vmatpush.msra.mxu2 %v1328_v56  ;;  %v794_v56 = vld [vmem:[#allocation9 + $0x1a8] sm:$0xff] }
 0x20f   :  { %846 = vmatpush.msra.mxu1 %v794_v56  ;;  %943 = vmatpush.msrb.mxu0 %v1358_v4 }
 0x210   :  { %915 = vmatpush.msra.mxu2 %v1332_v57  ;;  %v787_v57 = vld [vmem:[#allocation9 + $0x170] sm:$0xff]  ;;  %807 = vmatpush.msra.mxu3 %v788_v0 }
 0x211   :  { %944 = vmatpush.msrb.mxu0 %v1362_v5  ;;  %847 = vmatpush.msra.mxu1 %v793_v36 }
 0x212   :  { %916 = vmatpush.msra.mxu2 %v1336_v58  ;;  %808 = vmatpush.msra.mxu3 %v787_v57 }
 0x214   :  { %917 = vmatpush.msra.mxu2 %v1340_v59 }
 0x216   :  { %918 = vmatpush.msra.mxu2 %v1344_v61  ;;  %v786_v61 = vld [vmem:[#allocation9 + $0x168] sm:$0xff] }
 0x217   :  { %809 = vmatpush.msra.mxu3 %v786_v61 }
 0x218   :  { %919 = vmatpush.msra.mxu2 %v1346_v62 }
 0x21a   :  { %920 = vmatpush.msra.mxu2 %v1350_v2  ;;  %v785_v2 = vld [vmem:[#allocation9 + $0x160] sm:$0xff] }
 0x21b   :  { %810 = vmatpush.msra.mxu3 %v785_v2 }
 0x21c   :  { %921 = vmatpush.msra.mxu2 %v1354_v3 }
 0x21d   :  { %811 = vmatpush.msra.mxu3 %v784_v26 }
 0x21e   :  { %922 = vmatpush.msra.mxu2 %v1358_v4  ;;  %v783_v4 = vld [vmem:[#allocation9 + $0x150] sm:$0xff] }
 0x21f   :  { %812 = vmatpush.msra.mxu3 %v783_v4 }
 0x220   :  { %923 = vmatpush.msra.mxu2 %v1362_v5 }
 0x221   :  { %813 = vmatpush.msra.mxu3 %v782_v39 }
 0x223   :  { %814 = vmatpush.msra.mxu3 %v781_v21 }
 0x225   :  { %815 = vmatpush.msra.mxu3 %v780_v20 }
 0x227   :  { %816 = vmatpush.msra.mxu3 %v779_v47 }
 0x229   :  { %817 = vmatpush.msra.mxu3 %v778_v53 }
 0x22b   :  { %818 = vmatpush.msra.mxu3 %v777_v55 }
 0x252   :  { %v473_v52 = vpop.permute.xlu2 %472 }
 0x253   :  { %491 = vst.msk [vmem:[#allocation3] sm:$0xfe] %vm490_vm0, %v473_v52 }
 0x254   :  { %493 = vst.msk [vmem:[#allocation3 + $0x8] sm:$0xfe] %vm492_vm1, %v473_v52 }
 0x25a   :  { %v475_v58 = vpop.permute.xlu2 %474  ;;  %v510_v59 = vld [vmem:[#allocation3] sm:$0xff] }
 0x25b   :  { %495 = vst.msk [vmem:[#allocation3 + $0x10] sm:$0xff] %vm494_vm2, %v475_v58  ;;  %693 = vmatmul.f32.vlgmr.msrb.gmra.mxu2 %v510_v59  ;;  %v511_v62 = vld [vmem:[#allocation3 + $0x8] sm:$0xff]  ;;  %v536_v3 = vld [vmem:[#allocation3] sm:$0xfe] }
 0x25c   :  { %496 = vst.msk [vmem:[#allocation3 + $0x18] sm:$0xff] %vm430_vm10, %v475_v58  ;;  %1021 = vmatmul.msk.f32.vlgmr.msra.gmra.mxu0 %vm600_vm3, %v511_v62  ;;  %v537_v35 = vld [vmem:[#allocation3 + $0x8] sm:$0xfe]  ;;  %v557_v41 = vrot.slane %v536_v3, 1  ;;  %v735_v48 = vld [vmem:[#allocation3] sm:$0xfc] }
 0x25d   :  { %v560_v43 = vrot.slane %v537_v35, 1  ;;  %v736_v32 = vld [vmem:[#allocation3 + $0x8] sm:$0xfc]  ;;  %v752_v50 = vrot.slane %v735_v48, 2 }
 0x25e   :  { %v755_v49 = vrot.slane %v736_v32, 2 }
 0x262   :  { %v481_v37 = vpop.permute.xlu2 %480  ;;  %v1471_v38 = vld [vmem:[#allocation3 + $0x10] sm:$0xff] }
 0x263   :  { %503 = vst.msk [vmem:[#allocation3 + $0x40] sm:$0xff] %vm494_vm2, %v481_v37  ;;  %v558_v40 = vrot.slane %v1471_v38, 1  ;;  %696 = vmatmul.f32.gmra.mxu2 %v1471_v38  ;;  %v1476_v5 = vld [vmem:[#allocation3 + $0x18] sm:$0xff]  ;;  %v753_v34 = vrot.slane %v1471_v38, 2 }
 0x264   :  { %504 = vst.msk [vmem:[#allocation3 + $0x48] sm:$0xff] %vm430_vm10, %v481_v37  ;;  %v561_v42 = vrot.slane %v1476_v5, 1  ;;  %1022 = vmatmul.msk.f32.gmra.mxu0 %vm600_vm3, %v1476_v5  ;;  %v756_v33 = vrot.slane %v1476_v5, 2 }
 0x265   :  { %v559_v44 = vsel %vm556_vm4, %v557_v41, %v558_v40  ;;  %v754_v52 = vsel %vm751_vm7, %v752_v50, %v753_v34 }
 0x266   :  { %625 = vmatmul.f32.vlgmr.msrb.gmra.mxu1 %v559_v44  ;;  %v562_v17 = vsel %vm556_vm4, %v560_v43, %v561_v42  ;;  %v757_v51 = vsel %vm751_vm7, %v755_v49, %v756_v33 }
 0x267   :  { %1017 = vmatmul.msk.f32.vlgmr.msrb.gmra.mxu3 %vm600_vm3, %v562_v17 }
 0x269   :  { %v479_v45 = vpop.permute.xlu1 %478  ;;  %v477_v46 = vpop.permute.xlu0 %476 }
 0x26a   :  { %501 = vst.msk [vmem:[#allocation3 + $0x30] sm:$0xfe] %vm490_vm0, %v479_v45  ;;  %v516_v13 = vld [vmem:[#allocation3 + $0x40] sm:$0xff] }
 0x26b   :  { %502 = vst.msk [vmem:[#allocation3 + $0x38] sm:$0xfe] %vm492_vm1, %v479_v45  ;;  %v517_v14 = vld [vmem:[#allocation3 + $0x48] sm:$0xff]  ;;  %v568_v18 = vrot.slane %v516_v13, 1  ;;  %v763_v4 = vrot.slane %v516_v13, 2 }
 0x26c   :  { %498 = vst.msk [vmem:[#allocation3 + $0x20] sm:$0x1] %vm497_vm5, %v477_v46  ;;  %v571_v19 = vrot.slane %v517_v14, 1  ;;  %v766_v26 = vrot.slane %v517_v14, 2 }
 0x26d   :  { %500 = vst.msk [vmem:[#allocation3 + $0x28] sm:$0x1] %vm499_vm6, %v477_v46 }
 0x271   :  { %v483_v60 = vpop.permute.xlu0 %482  ;;  %v514_v63 = vld [vmem:[#allocation3 + $0x30] sm:$0xff] }
 0x272   :  { %505 = vst.msk [vmem:[#allocation3 + $0x50] sm:$0x1] %vm497_vm5, %v483_v60  ;;  %699 = vmatmul.f32.gmra.mxu2 %v514_v63  ;;  %v515_v1 = vld [vmem:[#allocation3 + $0x38] sm:$0xff]  ;;  %v540_v11 = vld [vmem:[#allocation3 + $0x30] sm:$0xfe] }
 0x273   :  { %506 = vst.msk [vmem:[#allocation3 + $0x58] sm:$0x1] %vm499_vm6, %v483_v60  ;;  %1023 = vmatmul.msk.f32.gmra.mxu0 %vm600_vm3, %v515_v1  ;;  %v538_v31 = vld [vmem:[#allocation3 + $0x20] sm:$0x1]  ;;  %v541_v12 = vld [vmem:[#allocation3 + $0x38] sm:$0xfe] }
 0x274   :  { %v563_v6 = vrot.slane %v538_v31, 1  ;;  %v539_v7 = vld [vmem:[#allocation3 + $0x28] sm:$0x1]  ;;  %v567_v15 = vrot.slane %v540_v11, 1  ;;  %v570_v16 = vrot.slane %v541_v12, 1 }
 0x275   :  { %v565_v8 = vrot.slane %v539_v7, 1  ;;  %v738_v54 = vld [vmem:[#allocation3 + $0x28] sm:$0x3]  ;;  %v737_v56 = vld [vmem:[#allocation3 + $0x20] sm:$0x3] }
 0x276   :  { %v564_v9 = vsel %vm556_vm4, %v558_v40, %v563_v6  ;;  %v569_v22 = vsel %vm556_vm4, %v567_v15, %v568_v18  ;;  %v572_v23 = vsel %vm556_vm4, %v570_v16, %v571_v19  ;;  %v760_v0 = vrot.slane %v738_v54, 2  ;;  %v740_v61 = vld [vmem:[#allocation3 + $0x38] sm:$0xfc]  ;;  %v739_v62 = vld [vmem:[#allocation3 + $0x30] sm:$0xfc] }
 0x277   :  { %628 = vmatmul.f32.gmra.mxu1 %v564_v9  ;;  %v566_v10 = vsel %vm556_vm4, %v561_v42, %v565_v8  ;;  %v758_v57 = vrot.slane %v737_v56, 2  ;;  %v765_v2 = vrot.slane %v740_v61, 2  ;;  %v762_v3 = vrot.slane %v739_v62, 2 }
 0x278   :  { %1018 = vmatmul.msk.f32.gmra.mxu3 %vm600_vm3, %v566_v10  ;;  %v761_v58 = vsel %vm751_vm7, %v756_v33, %v760_v0 }
 0x279   :  { %v542_v24 = vld [vmem:[#allocation3 + $0x50] sm:$0x1]  ;;  %v759_v59 = vsel %vm751_vm7, %v753_v34, %v758_v57  ;;  %v767_v35 = vsel %vm751_vm7, %v765_v2, %v766_v26  ;;  %v764_v36 = vsel %vm751_vm7, %v762_v3, %v763_v4 }
 0x27a   :  { %702 = vmatmul.f32.gmra.mxu2 %v516_v13  ;;  %v543_v25 = vld [vmem:[#allocation3 + $0x58] sm:$0x1]  ;;  %v573_v27 = vrot.slane %v542_v24, 1  ;;  %v741_v38 = vld [vmem:[#allocation3 + $0x50] sm:$0x3] }
 0x27b   :  { %1024 = vmatmul.msk.f32.gmra.mxu0 %vm600_vm3, %v517_v14  ;;  %v575_v28 = vrot.slane %v543_v25, 1  ;;  %v742_v37 = vld [vmem:[#allocation3 + $0x58] sm:$0x3]  ;;  %v768_v40 = vrot.slane %v741_v38, 2 }
 0x27c   :  { %v574_v29 = vsel %vm556_vm4, %v568_v18, %v573_v27  ;;  %v770_v39 = vrot.slane %v742_v37, 2 }
 0x27d   :  { %v576_v30 = vsel %vm556_vm4, %v571_v19, %v575_v28  ;;  %v769_v41 = vsel %vm751_vm7, %v763_v4, %v768_v40 }
 0x27e   :  { %v771_v5 = vsel %vm751_vm7, %v766_v26, %v770_v39 }
 0x27f   :  { %631 = vmatmul.f32.gmra.mxu1 %v569_v22 }
 0x280   :  { %1019 = vmatmul.msk.f32.gmra.mxu3 %vm600_vm3, %v572_v23 }
 0x287   :  { %634 = vmatmul.f32.gmra.mxu1 %v574_v29 }
 0x288   :  { %1020 = vmatmul.msk.f32.gmra.mxu3 %vm600_vm3, %v576_v30  ;;  %v1040_v30 = vld [vmem:[#allocation12 + $0x3] ss:$0 sm:$0xff] }
 0x28f   :  { %1025 = vmatmul.msk.f32.vlgmr.msra.gmra.mxu1 %vm600_vm3, %v757_v51 }
 0x290   :  { %819 = vmatmul.f32.vlgmr.msra.gmra.mxu3 %v754_v52 }
 0x297   :  { %1026 = vmatmul.msk.f32.gmra.mxu1 %vm600_vm3, %v761_v58 }
 0x298   :  { %822 = vmatmul.f32.gmra.mxu3 %v759_v59 }
 0x29f   :  { %1027 = vmatmul.msk.f32.gmra.mxu1 %vm600_vm3, %v767_v35 }
 0x2a0   :  { %825 = vmatmul.f32.gmra.mxu3 %v764_v36 }
 0x2a7   :  { %1028 = vmatmul.msk.f32.gmra.mxu1 %vm600_vm3, %v771_v5 }
 0x2a8   :  { %828 = vmatmul.f32.gmra.mxu3 %v769_v41 }
 0x2d9   :  { %v723_v55 = vpop.f32.mrf.mxu0 }
 0x2de   :  { %v694_v46 = vpop.f32.mrf.mxu2 }
 0x2e1   :  { %v726_v31 = vpop.f32.mrf.mxu0 }
 0x2e3   :  { %v626_v42 = vpop.f32.mrf.mxu1 }
 0x2e6   :  { %v697_v63 = vpop.f32.mrf.mxu2 }
 0x2ea   :  { %v655_v43 = vpop.f32.mrf.mxu3 }
 0x2eb   :  { %v656_v7 = vadd.f32 %v655_v43, %v626_v42 }
 0x2ed   :  { %v695_v12 = vadd.f32 %v694_v46, %v656_v7 }
 0x2ef   :  { %v724_v22 = vadd.f32 %v723_v55, %v695_v12 }
 0x2f0   :  { %v729_v13 = vpop.f32.mrf.mxu0 }
 0x2f4   :  { %v629_v44 = vpop.f32.mrf.mxu1 }
 0x2f5   :  { %v700_v10 = vpop.f32.mrf.mxu2 }
 0x2f8   :  { %v732_v49 = vpop.f32.mrf.mxu0 }
 0x2fb   :  { %v658_v21 = vpop.f32.mrf.mxu3 }
 0x2fc   :  { %v632_v17 = vpop.f32.mrf.mxu1  ;;  %v659_v6 = vadd.f32 %v658_v21, %v629_v44 }
 0x2fd   :  { %v703_v33 = vpop.f32.mrf.mxu2 }
 0x2fe   :  { %v698_v11 = vadd.f32 %v697_v63, %v659_v6 }
 0x300   :  { %v727_v19 = vadd.f32 %v726_v31, %v698_v11 }
 0x303   :  { %v661_v20 = vpop.f32.mrf.mxu3 }
 0x304   :  { %v635_v45 = vpop.f32.mrf.mxu1  ;;  %v662_v9 = vadd.f32 %v661_v20, %v632_v17 }
 0x306   :  { %v701_v14 = vadd.f32 %v700_v10, %v662_v9  ;;  %v508_v10 = vld [vmem:[#allocation12 + $0x4] sm:$0x1] }
 0x308   :  { %v730_v27 = vadd.f32 %v729_v13, %v701_v14  ;;  %v509_v14 = vld [vmem:[#allocation12 + $0x5] sm:$0x1] }
 0x30b   :  { %v664_v47 = vpop.f32.mrf.mxu3 }
 0x30c   :  { %v849_v53 = vpop.f32.mrf.mxu1  ;;  %v665_v24 = vadd.f32 %v664_v47, %v635_v45 }
 0x30e   :  { %v704_v48 = vadd.f32 %v703_v33, %v665_v24 }
 0x310   :  { %v733_v0 = vadd.f32 %v732_v49, %v704_v48 }
 0x313   :  { %v820_v60 = vpop.f32.mrf.mxu3 }
 0x314   :  { %v852_v1 = vpop.f32.mrf.mxu1  ;;  %v850_v18 = vadd.f32 %v849_v53, %v820_v60 }
 0x316   :  { %v861_v29 = vadd.f32 %v850_v18, %v724_v22 }
 0x318   :  { %v866_v50 = vadd.f32 %v1040_v30, %v861_v29 }
 0x31a   :  { %v879_v58 = vmul.f32 %v866_v50, %v866_v50 }
 0x31b   :  { %v823_v8 = vpop.f32.mrf.mxu3 }
 0x31c   :  { %v853_v15 = vadd.f32 %v852_v1, %v823_v8  ;;  %v855_v16 = vpop.f32.mrf.mxu1 }
 0x31e   :  { %v862_v25 = vadd.f32 %v853_v15, %v727_v19 }
 0x320   :  { %v867_v34 = vadd.f32 %v1040_v30, %v862_v25 }
 0x322   :  { %v880_v56 = vmul.f32 %v867_v34, %v867_v34  ;;  %v870_v59 = vadd.f32 %v867_v34, %v866_v50 }
 0x323   :  { %v826_v23 = vpop.f32.mrf.mxu3 }
 0x324   :  { %v856_v28 = vadd.f32 %v855_v16, %v826_v23  ;;  %v858_v52 = vpop.f32.mrf.mxu1  ;;  %v883_v2 = vadd.f32 %v880_v56, %v879_v58 }
 0x326   :  { %v863_v32 = vadd.f32 %v856_v28, %v730_v27 }
 0x328   :  { %v868_v51 = vadd.f32 %v1040_v30, %v863_v32 }
 0x32a   :  { %v881_v61 = vmul.f32 %v868_v51, %v868_v51  ;;  %v871_v3 = vadd.f32 %v870_v59, %v868_v51 }
 0x32b   :  { %v829_v54 = vpop.f32.mrf.mxu3 }
 0x32c   :  { %v859_v57 = vadd.f32 %v858_v52, %v829_v54  ;;  %v884_v4 = vadd.f32 %v883_v2, %v881_v61 }
 0x32e   :  { %v864_v62 = vadd.f32 %v859_v57, %v733_v0 }
 0x330   :  { %v869_v26 = vadd.f32 %v1040_v30, %v864_v62 }
 0x332   :  { %v872_v35 = vadd.f32 %v871_v3, %v869_v26  ;;  %v882_v36 = vmul.f32 %v869_v26, %v869_v26 }
 0x334   :  { %v873_v37 = vrot.slane %v872_v35, 4  ;;  %v885_v38 = vadd.f32 %v884_v4, %v882_v36 }
 0x336   :  { %v874_v39 = vadd.f32 %v873_v37, %v872_v35  ;;  %v886_v40 = vrot.slane %v885_v38, 4 }
 0x338   :  { %v875_v5 = vrot.slane %v874_v39, 2  ;;  %v887_v41 = vadd.f32 %v886_v40, %v885_v38 }
 0x33a   :  { %v876_v42 = vadd.f32 %v875_v5, %v874_v39  ;;  %v888_v43 = vrot.slane %v887_v41, 2 }
 0x33c   :  { %v877_v44 = vrot.slane %v876_v42, 1  ;;  %v889_v21 = vadd.f32 %v888_v43, %v887_v41 }
 0x33e   :  { %v878_v17 = vadd.f32 %v877_v44, %v876_v42  ;;  %v890_v20 = vrot.slane %v889_v21, 1 }
 0x340   :  { %924 = vmatmul.f32.vlgmr.msra.gmra.mxu2 %v878_v17  ;;  %v891_v45 = vadd.f32 %v890_v20, %v889_v21 }
 0x342   :  { %945 = vmatmul.f32.vlgmr.msrb.gmra.mxu0 %v891_v45 }
 0x3bf   :  { %v946_v46 = vpop.f32.mrf.mxu0 }
 0x3c0   :  { %v949_v55 = vmul.f32 0.001953125, %v946_v46 }
 0x3c3   :  { %v925_v47 = vpop.f32.mrf.mxu2 }
 0x3c4   :  { %v928_v53 = vmul.f32 0.001953125, %v925_v47 }
 0x3c6   :  { %v950_v60 = vmul.f32 %v928_v53, %v928_v53 }
 0x3c8   :  { %v951_v63 = vsub.f32 %v949_v55, %v950_v60 }
 0x3ca   :  { %v952_v1 = vadd.f32 1e-05, %v951_v63 }
 0x3cc   :  { %1043 = vrsqrt.f32 %v952_v1  ;;  %vm959_vm9 = vweird.f32 %v952_v1 }
 0x3d2   :  { %v1044_v31 = vpop.eup %1043 }
 0x3d3   :  { %v954_v6 = vmul.f32 %v1044_v31, %v952_v1  ;;  %vm960_vm8 = vweird.f32 %v1044_v31 }
 0x3d4   :  { %vm961_vm10 = vmor %vm959_vm9, %vm960_vm8 }
 0x3d5   :  { %v955_v7 = vmul.f32 %v1044_v31, %v954_v6 }
 0x3d7   :  { %v956_v8 = vmul.f32 0.5, %v955_v7 }
 0x3d9   :  { %v957_v9 = vsub.f32 1.5, %v956_v8 }
 0x3db   :  { %v958_v11 = vmul.f32 %v1044_v31, %v957_v9 }
 0x3dd   :  { %v962_v12 = vsel %vm961_vm10, %v1044_v31, %v958_v11 }
 0x3de   :  { %v963_v13 = vmul.f32 %v962_v12, %v508_v10 }
 0x3e0   :  { %v964_v15 = vmul.f32 %v963_v13, %v928_v53  ;;  %v966_v16 = vperm.slane %v963_v13, 0 }
 0x3e2   :  { %v965_v18 = vsub.f32 %v509_v14, %v964_v15  ;;  %v967_v19 = vmul.f32 %v966_v16, %v866_v50  ;;  %v968_v22 = vmul.f32 %v966_v16, %v867_v34  ;;  %v969_v23 = vmul.f32 %v966_v16, %v868_v51 }
 0x3e3   :  { %v970_v24 = vmul.f32 %v966_v16, %v869_v26 }
 0x3e4   :  { %v971_v25 = vperm.slane %v965_v18, 0 }
 0x3e6   :  { %v972_v27 = vadd.f32 %v971_v25, %v967_v19  ;;  %v973_v28 = vadd.f32 %v971_v25, %v968_v22  ;;  %v974_v29 = vadd.f32 %v971_v25, %v969_v23  ;;  %v975_v30 = vadd.f32 %v971_v25, %v970_v24 }
 0x3e8   :  { %v976_v32 = vmax.f32 %v972_v27, 0.0  ;;  %v977_v33 = vmax.f32 %v973_v28, 0.0  ;;  %v978_v48 = vmax.f32 %v974_v29, 0.0  ;;  %v979_v49 = vmax.f32 %v975_v30, 0.0 }
 0x3ea   :  { %980 = vst [vmem:[#allocation13] sm:$0xff] %v976_v32 }
 0x3eb   :  { %981 = vst [vmem:[#allocation13 + $0x8] sm:$0xff] %v977_v33 }
 0x3ec   :  { %982 = vst [vmem:[#allocation13 + $0x10] sm:$0xff] %v978_v48 }
 0x3ed   :  { %983 = vst [vmem:[#allocation13 + $0x18] sm:$0xff] %v979_v49 }
 0x3ee   :  { %996 = dma.vmem_to_hbm [thread:$0]  %s989_s17, 512, %s991_s20, [#allocation6], %s1198_s26, %s1198_s26, %s1199_s27  }
 0x3ef   :  { %1195 = dma.done.wait [#allocation6], 512  }
 0x3f0   :  { %1196 = vsyncadd [#allocation6], 4294966784 }
 0x3f1   :  { %1001 = vsyncpa [#allocation5], 1 }
 0x3f2   :  { %1002 = vsyncpa [#allocation8], 1 }
 0x3f3   :  { %1003 = vsyncpa [#allocation11], 1 }
 0x3f4   :  { %1004 = vsyncpa [#allocation6], 1 }

</bundles_post_ra>
